<compile_context>
chip_gen: v7x
topology: tpu7x:2x2x1
jax: 0.10.0
libtpu: 0.0.40
codegen_flags: <defaults>
</compile_context>

<pallas_src>
from functools import partial

import jax
import jax.numpy as jnp
from jax.experimental import pallas as pl
from jax.experimental.pallas import tpu as pltpu

LANES = 128         # lane width of a vreg (last dim)
SUBLANES = 8        # sublanes of an f32 vreg
ROWS_PER_ITER = 64  # rows per inner-loop slab (8 sublane groups; mult. of 32 -> ok for bf16/i8)
MAX_TM = 2048       # rows per grid step: 1 MiB f32 block/input, 4 MiB double-buffered total


def _make_kernel(threshold: float, tm: int, total: int):
    n_iter = tm // ROWS_PER_ITER
    block_elems = tm * LANES
    thr = float(threshold)

    def kernel(pred_ref, tgt_ref, out_ref):
        k = pl.program_id(0)

        @pl.when(k == 0)
        def _():
            out_ref[...] = jnp.zeros_like(out_ref)

        # Valid elements remaining from the start of this block; clamps the
        # ragged tail and any Pallas edge-block (unspecified) padding.
        # TODO(synk): int32 flat indexing limits inputs to < 2**31 elements.
        remaining = jnp.int32(total) - k * jnp.int32(block_elems)

        # Loop-invariant flat index of every element of one 64x128 slab.
        row = jax.lax.broadcasted_iota(jnp.int32, (ROWS_PER_ITER, LANES), 0)
        lane = jax.lax.broadcasted_iota(jnp.int32, (ROWS_PER_ITER, LANES), 1)
        local_idx = row * LANES + lane

        def body(g, carry):
            r0 = pl.multiple_of(g * ROWS_PER_ITER, ROWS_PER_ITER)
            p = pred_ref[pl.ds(r0, ROWS_PER_ITER), :].astype(jnp.float32)
            t = tgt_ref[pl.ds(r0, ROWS_PER_ITER), :].astype(jnp.float32)
            match = (p > thr) == (t > thr)
            valid = local_idx < (remaining - r0 * LANES)
            counts = (match & valid).astype(jnp.int32)
            # (64,128) -> (8,8,128) splits the sublane axis on tile boundaries;
            # sum over the leading axis is pure VPU adds into the resident acc.
            out_ref[...] += counts.reshape(
                ROWS_PER_ITER // SUBLANES, SUBLANES, LANES).sum(axis=0)
            return carry

        jax.lax.fori_loop(0, n_iter, body, 0, unroll=True)

    return kernel


@partial(jax.jit, static_argnames=("threshold",))
def directional_accuracy(predictions, targets, threshold: float = 0.0):
    """Pallas implementation of DirectionalAccuracy.forward. Returns scalar f32."""
    p = jnp.reshape(predictions, (-1,))
    t = jnp.reshape(targets, (-1,))
    total = p.size
    if t.size != total:
        # TODO(synk): torch would broadcast differently-shaped squeezed inputs.
        raise ValueError("predictions and targets must have the same element count")

    rows_exact = pl.cdiv(total, LANES) if total else 0
    if rows_exact >= ROWS_PER_ITER:
        # Round DOWN so the block never exceeds the array's row count; the
        # partial grid-tail block is handled by the in-kernel mask.
        tm = min(MAX_TM, (rows_exact // ROWS_PER_ITER) * ROWS_PER_ITER)
        rows = rows_exact
    else:
        tm = ROWS_PER_ITER
        rows = ROWS_PER_ITER

    pad = rows * LANES - total
    if pad:  # only ragged (non 128-multiple) or tiny inputs pay this copy
        p = jnp.pad(p, (0, pad))
        t = jnp.pad(t, (0, pad))
    p2 = p.reshape(rows, LANES)
    t2 = t.reshape(rows, LANES)
    steps = pl.cdiv(rows, tm)

    counts = pl.pallas_call(
        _make_kernel(threshold, tm, total),
        out_shape=jax.ShapeDtypeStruct((SUBLANES, LANES), jnp.int32),
        grid=(steps,),
        in_specs=[
            pl.BlockSpec((tm, LANES), lambda k: (k, 0)),
            pl.BlockSpec((tm, LANES), lambda k: (k, 0)),
        ],
        out_specs=pl.BlockSpec((SUBLANES, LANES), lambda k: (0, 0)),
        compiler_params=pltpu.CompilerParams(
            dimension_semantics=("arbitrary",),
        ),
    )(p2, t2)

    matches = jnp.sum(counts).astype(jnp.float32)
    return matches / jnp.float32(total)


def directional_loss(predictions, targets, threshold: float = 0.0):
    """Pallas implementation of DirectionalAccuracy.loss = 1 - accuracy."""
    return 1.0 - directional_accuracy(predictions, targets, threshold=threshold)


if __name__ == "__main__":
    key = jax.random.PRNGKey(0)
    kp, kt = jax.random.split(key)

    def ref_accuracy(p, t, thr=0.0):
        pd = (jnp.squeeze(p) > thr).astype(jnp.float32)
        td = (jnp.squeeze(t) > thr).astype(jnp.float32)
        return jnp.mean((pd == td).astype(jnp.float32))

    # Model-output-like shape (batch, seq, 1); squeeze drops the trailing
    # singleton exactly like the torch module.
    predictions = jax.random.normal(kp, (16, 128, 1), dtype=jnp.float32)
    targets = jax.random.normal(kt, (16, 128, 1), dtype=jnp.float32)
    acc = jax.block_until_ready(directional_accuracy(predictions, targets))
    ref = ref_accuracy(predictions, targets)
    assert jnp.allclose(acc, ref, atol=1e-6), (acc, ref)

    loss = jax.block_until_ready(directional_loss(predictions, targets))
    assert jnp.allclose(loss, 1.0 - ref, atol=1e-6), (loss, 1.0 - ref)

    # Ragged (non 128-multiple) size: exercises the in-kernel tail mask.
    p3 = jax.random.normal(kp, (3, 50), dtype=jnp.float32)
    t3 = jax.random.normal(kt, (3, 50), dtype=jnp.float32)
    acc3 = jax.block_until_ready(directional_accuracy(p3, t3, threshold=0.1))
    ref3 = ref_accuracy(p3, t3, 0.1)
    assert jnp.allclose(acc3, ref3, atol=1e-6), (acc3, ref3)

    # Multi-step grid with a partial last block on the zero-copy path
    # (2*1040*128 = 266,240 elements -> 2080 rows > tm=2048, divisible by 128).
    p4 = jax.random.normal(kp, (2, 1040, 128), dtype=jnp.float32)
    t4 = jax.random.normal(kt, (2, 1040, 128), dtype=jnp.float32)
    acc4 = jax.block_until_ready(directional_accuracy(p4, t4))
    ref4 = ref_accuracy(p4, t4)
    assert jnp.allclose(acc4, ref4, atol=1e-6), (acc4, ref4)

    print("KERNEL_OK")
</pallas_src>

<mosaic_0001>
module attributes {stable_mosaic.version = 11 : i64} {
  func.func @kernel(%arg0: i32, %arg1: memref<64x128xf32, #tpu.memory_space<vmem>>, %arg2: memref<64x128xf32, #tpu.memory_space<vmem>>, %arg3: memref<8x128xi32, #tpu.memory_space<vmem>>) attributes {dimension_semantics = [#tpu.dimension_semantics<arbitrary>], iteration_bounds = array<i64: 1>, scalar_prefetch = 0 : i64, scratch_operands = 0 : i64, tpu.core_type = #tpu.core_type<tc>, window_params = [{transform_indices = @transform_0, window_bounds = array<i64: 64, 128>}, {transform_indices = @transform_1, window_bounds = array<i64: 64, 128>}, {pipeline_mode = #tpu.pipeline_mode<synchronous>, transform_indices = @transform_2, window_bounds = array<i64: 8, 128>}]} {
    %c0_i32 = arith.constant 0 : i32
    %0 = arith.cmpi eq, %arg0, %c0_i32 : i32
    %1 = arith.extui %0 : i1 to i32
    %c0_i32_0 = arith.constant 0 : i32
    %2 = arith.cmpi ne, %1, %c0_i32_0 : i32
    scf.if %2 {
      %c0_i32_11 = arith.constant 0 : i32
      %33 = vector.broadcast %c0_i32_11 : i32 to vector<8x128xi32>
      %c0_12 = arith.constant 0 : index
      %c0_13 = arith.constant 0 : index
      %34 = vector.load %arg3[%c0_12, %c0_13] : memref<8x128xi32, #tpu.memory_space<vmem>>, vector<8x128xi32>
      tpu.vector_store %arg3[%c0_12, %c0_13], %33 {strides = array<i32>} : memref<8x128xi32, #tpu.memory_space<vmem>>, vector<8x128xi32>,
    } else {
    }
    %c8192_i32 = arith.constant 8192 : i32
    %3 = arith.muli %arg0, %c8192_i32 : i32
    %c2048_i32 = arith.constant 2048 : i32
    %4 = arith.subi %c2048_i32, %3 : i32
    %5 = tpu.iota {dimensions = array<i32: 0>} : vector<64x128xi32>
    %6 = tpu.iota {dimensions = array<i32: 1>} : vector<64x128xi32>
    %c128_i32 = arith.constant 128 : i32
    %7 = vector.broadcast %c128_i32 : i32 to vector<64x128xi32>
    %8 = arith.muli %5, %7 : vector<64x128xi32>
    %9 = arith.addi %8, %6 : vector<64x128xi32>
    %c0_i32_1 = arith.constant 0 : i32
    %c64_i32 = arith.constant 64 : i32
    %10 = arith.muli %c0_i32_1, %c64_i32 : i32
    %11 = tpu.assume_multiple %10, 64 : i32
    %12 = arith.index_cast %11 : i32 to index
    %c0 = arith.constant 0 : index
    %13 = vector.load %arg1[%12, %c0] : memref<64x128xf32, #tpu.memory_space<vmem>>, vector<64x128xf32>
    %14 = arith.index_cast %11 : i32 to index
    %c0_2 = arith.constant 0 : index
    %15 = vector.load %arg2[%14, %c0_2] : memref<64x128xf32, #tpu.memory_space<vmem>>, vector<64x128xf32>
    %cst = arith.constant 0.000000e+00 : f32
    %16 = vector.broadcast %cst : f32 to vector<64x128xf32>
    %17 = arith.cmpf ogt, %13, %16 : vector<64x128xf32>
    %cst_3 = arith.constant 0.000000e+00 : f32
    %18 = vector.broadcast %cst_3 : f32 to vector<64x128xf32>
    %19 = arith.cmpf ogt, %15, %18 : vector<64x128xf32>
    %20 = arith.xori %17, %19 : vector<64x128xi1>
    %cst_4 = arith.constant dense<true> : vector<64x128xi1>
    %21 = arith.xori %20, %cst_4 : vector<64x128xi1>
    %c128_i32_5 = arith.constant 128 : i32
    %22 = arith.muli %11, %c128_i32_5 : i32
    %23 = arith.subi %4, %22 : i32
    %24 = vector.broadcast %23 : i32 to vector<64x128xi32>
    %25 = arith.cmpi slt, %9, %24 : vector<64x128xi32>
    %26 = arith.andi %21, %25 : vector<64x128xi1>
    %27 = arith.extui %26 : vector<64x128xi1> to vector<64x128xi32>
    %c0_6 = arith.constant 0 : index
    %c0_7 = arith.constant 0 : index
    %28 = vector.load %arg3[%c0_6, %c0_7] : memref<8x128xi32, #tpu.memory_space<vmem>>, vector<8x128xi32>
    %29 = vector.shape_cast %27 : vector<64x128xi32> to vector<8x8x128xi32>
    %cst_8 = arith.constant dense<0> : vector<8x128xi32>
    %30 = vector.multi_reduction <add>, %29, %cst_8 [0] : vector<8x8x128xi32> to vector<8x128xi32>
    %31 = arith.addi %28, %30 : vector<8x128xi32>
    %c0_9 = arith.constant 0 : index
    %c0_10 = arith.constant 0 : index
    %32 = vector.load %arg3[%c0_9, %c0_10] : memref<8x128xi32, #tpu.memory_space<vmem>>, vector<8x128xi32>
    tpu.vector_store %arg3[%c0_9, %c0_10], %31 {strides = array<i32>} : memref<8x128xi32, #tpu.memory_space<vmem>>, vector<8x128xi32>,
    %c1_i32 = arith.constant 1 : i32
    return
  }
  func.func @transform_0(%arg0: i32) -> (i32, i32) {
    %c0_i32 = arith.constant 0 : i32
    %c0_i32_0 = arith.constant 0 : i32
    return %arg0, %c0_i32 : i32, i32
  }
  func.func @transform_1(%arg0: i32) -> (i32, i32) {
    %c0_i32 = arith.constant 0 : i32
    %c0_i32_0 = arith.constant 0 : i32
    return %arg0, %c0_i32 : i32, i32
  }
  func.func @transform_2(%arg0: i32) -> (i32, i32) {
    %c0_i32 = arith.constant 0 : i32
    %c0_i32_0 = arith.constant 0 : i32
    %c0_i32_1 = arith.constant 0 : i32
    return %c0_i32, %c0_i32_0 : i32, i32
  }
}

</mosaic_0001>

<bundles_post_ra>
// kernel: directional_accuracy.1
= control target key start
LH: loop header
LB: loop body
LE: loop exit
PB: predicated region body
PF: predicated region fallthrough
CT: control target
= control target key end

     0   :  { %v18_v0 = vlaneseq  ;;  %v317_v19 = vmov 0  ;;  %v338_v47 = vmov 0  ;;  %v340_v50 = vmov 0  ;;  %s312_s0 = inlined_call_operand.vmem [shape: f32[64,128], index: 0, kind: input, shape index: {}]   ;;  %s313_s1 = inlined_call_operand.vmem [shape: f32[64,128], index: 1, kind: input, shape index: {}]   ;;  %s314_s2 = inlined_call_operand.vmem [shape: s32[8,128], index: 2, kind: output, shape index: {}]  }
   0x1   :  { %v45_v1 = vld [vmem:[%s312_s0] sm:$0xff]  ;;  %v46_v2 = vld [vmem:[%s312_s0 + $0x8] sm:$0xff]  ;;  %v47_v3 = vld [vmem:[%s312_s0 + $0x10] sm:$0xff]  ;;  %v342_v52 = vmov 0  ;;  %v344_v54 = vmov 0  ;;  %v346_v56 = vmov 0 }
   0x2   :  { %v48_v4 = vld [vmem:[%s312_s0 + $0x18] sm:$0xff]  ;;  %v53_v5 = vld [vmem:[%s313_s1] sm:$0xff]  ;;  %v54_v6 = vld [vmem:[%s313_s1 + $0x8] sm:$0xff]  ;;  %vm61_vm0 = vcmp.gt.f32.partialorder %v45_v1, 0.0  ;;  %v19_v9 = vshrl.u32 %v18_v0, 7  ;;  %vm62_vm1 = vcmp.gt.f32.partialorder %v46_v2, 0.0 }
   0x3   :  { %v55_v7 = vld [vmem:[%s313_s1 + $0x10] sm:$0xff]  ;;  %v56_v8 = vld [vmem:[%s313_s1 + $0x18] sm:$0xff]  ;;  %v49_v10 = vld [vmem:[%s312_s0 + $0x20] sm:$0xff]  ;;  %vm63_vm2 = vcmp.gt.f32.partialorder %v47_v3, 0.0  ;;  %vm69_vm3 = vcmp.gt.f32.partialorder %v53_v5, 0.0  ;;  %vm64_vm4 = vcmp.gt.f32.partialorder %v48_v4, 0.0 }
   0x4   :  { %v57_v11 = vld [vmem:[%s313_s1 + $0x20] sm:$0xff]  ;;  %v50_v12 = vld [vmem:[%s312_s0 + $0x28] sm:$0xff]  ;;  %v51_v14 = vld [vmem:[%s312_s0 + $0x30] sm:$0xff]  ;;  %vm70_vm5 = vcmp.gt.f32.partialorder %v54_v6, 0.0  ;;  %vm71_vm6 = vcmp.gt.f32.partialorder %v55_v7, 0.0  ;;  %vm72_vm7 = vcmp.gt.f32.partialorder %v56_v8, 0.0 }
   0x5   :  { %v58_v13 = vld [vmem:[%s313_s1 + $0x28] sm:$0xff]  ;;  %v59_v15 = vld [vmem:[%s313_s1 + $0x30] sm:$0xff]  ;;  %vm196_vm8 = vmxor %vm61_vm0, %vm69_vm3  ;;  %vm65_vm9 = vcmp.gt.f32.partialorder %v49_v10, 0.0  ;;  %vm73_vm10 = vcmp.gt.f32.partialorder %v57_v11, 0.0  ;;  %v20_v20 = vadd.s32 8, %v19_v9  ;;  %vm66_vm12 = vcmp.gt.f32.partialorder %v50_v12, 0.0 }
   0x6   :  { %v52_v17 = vld [vmem:[%s312_s0 + $0x38] sm:$0xff]  ;;  %vm207_vm11 = vmxor %vm62_vm1, %vm70_vm5  ;;  %vm74_vm13 = vcmp.gt.f32.partialorder %v58_v13, 0.0  ;;  %v21_v22 = vadd.s32 16, %v19_v9  ;;  %vm67_vm15 = vcmp.gt.f32.partialorder %v51_v14, 0.0  ;;  %vm75_vm0 = vcmp.gt.f32.partialorder %v59_v15, 0.0 }
   0x7   :  { %v60_v18 = vld [vmem:[%s313_s1 + $0x38] sm:$0xff]  ;;  %v318_v19 = vsel %vm207_vm11, 4294967295, %v317_v19  ;;  %vm212_vm14 = vmxor %vm63_vm2, %vm71_vm6  ;;  %v22_v24 = vadd.s32 24, %v19_v9  ;;  %vm68_vm1 = vcmp.gt.f32.partialorder %v52_v17, 0.0  ;;  %v23_v26 = vadd.s32 32, %v19_v9 }
   0x8   :  { %vm217_vm3 = vmxor %vm64_vm4, %vm72_vm7  ;;  %vm76_vm5 = vcmp.gt.f32.partialorder %v60_v18, 0.0  ;;  %v28_v27 = vand.u32 127, %v18_v0  ;;  %v29_v28 = vmul.u32 128, %v19_v9  ;;  %v24_v30 = vadd.s32 40, %v19_v9 }
   0x9   :  { %vm221_vm11 = vmxor %vm65_vm9, %vm73_vm10  ;;  %v30_v31 = vmul.u32 128, %v20_v20  ;;  %v25_v33 = vadd.s32 48, %v19_v9  ;;  %v31_v34 = vmul.u32 128, %v21_v22  ;;  %v26_v36 = vadd.s32 56, %v19_v9 }
   0xa   :  { %vm225_vm2 = vmxor %vm66_vm12, %vm74_vm13  ;;  %v32_v37 = vmul.u32 128, %v22_v24  ;;  %vm136_vm7 = vmmov 1   ;;  %v33_v39 = vmul.u32 128, %v23_v26  ;;  %v37_v40 = vadd.s32 %v29_v28, %v28_v27 }
   0xb   :  { %vm229_vm4 = vmxor %vm67_vm15, %vm75_vm0  ;;  %vm333_vm10 = vnez %v318_v19  ;;  %v34_v42 = vmul.u32 128, %v24_v30  ;;  %v38_v43 = vadd.s32 %v30_v31, %v28_v27  ;;  %v35_v45 = vmul.u32 128, %v25_v33 }
   0xc   :  { %vm233_vm6 = vmxor %vm68_vm1, %vm76_vm5  ;;  %v39_v46 = vadd.s32 %v31_v34, %v28_v27  ;;  %v36_v48 = vmul.u32 128, %v26_v36  ;;  %v40_v49 = vadd.s32 %v32_v37, %v28_v27  ;;  %v41_v51 = vadd.s32 %v33_v39, %v28_v27 }
   0xd   :  { %vm240_vm9 = vmxor %vm196_vm8, %vm136_vm7  ;;  %vm96_vm0 = vcmp.lt.s32.totalorder %v37_v40, 2048  ;;  %v42_v53 = vadd.s32 %v34_v42, %v28_v27  ;;  %v43_v55 = vadd.s32 %v35_v45, %v28_v27  ;;  %v137_v58 = vmov 0  }
   0xe   :  { %vm247_vm12 = vmxor %vm333_vm10, %vm136_vm7  ;;  %vm98_vm5 = vcmp.lt.s32.totalorder %v39_v46, 2048  ;;  %v44_v57 = vadd.s32 %v36_v48, %v28_v27 }
   0xf   :  { %vm254_vm13 = vmxor %vm212_vm14, %vm136_vm7 }
  0x10   :  { %vm261_vm8 = vmxor %vm217_vm3, %vm136_vm7 }
  0x11   :  { %v339_v47 = vsel %vm261_vm8, 4294967295, %v338_v47  ;;  %vm268_vm15 = vmxor %vm221_vm11, %vm136_vm7  ;;  %vm97_vm11 = vcmp.lt.s32.totalorder %v38_v43, 2048  ;;  %vm102_vm8 = vcmp.lt.s32.totalorder %v43_v55, 2048 }
  0x12   :  { %v341_v50 = vsel %vm268_vm15, 4294967295, %v340_v50  ;;  %vm275_vm14 = vmxor %vm225_vm2, %vm136_vm7  ;;  %vm99_vm2 = vcmp.lt.s32.totalorder %v40_v49, 2048 }
  0x13   :  { %v343_v52 = vsel %vm275_vm14, 4294967295, %v342_v52  ;;  %vm282_vm3 = vmxor %vm229_vm4, %vm136_vm7  ;;  %vm100_vm14 = vcmp.lt.s32.totalorder %v41_v51, 2048 }
  0x14   :  { %v345_v54 = vsel %vm282_vm3, 4294967295, %v344_v54  ;;  %vm289_vm1 = vmxor %vm233_vm6, %vm136_vm7  ;;  %vm101_vm3 = vcmp.lt.s32.totalorder %v42_v53, 2048  ;;  %vm348_vm6 = vnez %v339_v47 }
  0x15   :  { %v347_v56 = vsel %vm289_vm1, 4294967295, %v346_v56  ;;  %vm104_vm10 = vmand %vm240_vm9, %vm96_vm0  ;;  %vm103_vm1 = vcmp.lt.s32.totalorder %v44_v57, 2048  ;;  %vm349_vm0 = vnez %v341_v50 }
  0x16   :  { %vm105_vm4 = vmand %vm247_vm12, %vm97_vm11  ;;  %v112_v59 = vsel %vm104_vm10, 1, %v137_v58  ;;  %vm350_vm11 = vnez %v343_v52 }
  0x17   :  { %vm106_vm15 = vmand %vm254_vm13, %vm98_vm5  ;;  %v113_v60 = vsel %vm105_vm4, 1, %v137_v58  ;;  %vm351_vm5 = vnez %v345_v54 }
  0x18   :  { %vm107_vm7 = vmand %vm348_vm6, %vm99_vm2  ;;  %v114_v61 = vsel %vm106_vm15, 1, %v137_v58  ;;  %vm352_vm2 = vnez %v347_v56 }
  0x19   :  { %vm108_vm9 = vmand %vm349_vm0, %vm100_vm14  ;;  %v115_v63 = vsel %vm107_vm7, 1, %v137_v58 }
  0x1a   :  { %vm109_vm12 = vmand %vm350_vm11, %vm101_vm3  ;;  %v116_v62 = vsel %vm108_vm9, 1, %v137_v58 }
  0x1b   :  { %vm110_vm13 = vmand %vm351_vm5, %vm102_vm8  ;;  %v117_v0 = vsel %vm109_vm12, 1, %v137_v58  ;;  %v121_v1 = vadd.s32 %v116_v62, %v112_v59 }
  0x1c   :  { %vm111_vm6 = vmand %vm352_vm2, %vm103_vm1  ;;  %v118_v2 = vsel %vm110_vm13, 1, %v137_v58  ;;  %v122_v3 = vadd.s32 %v117_v0, %v113_v60 }
  0x1d   :  { %v119_v4 = vsel %vm111_vm6, 1, %v137_v58  ;;  %v123_v5 = vadd.s32 %v118_v2, %v114_v61 }
  0x1e   :  { %v124_v6 = vadd.s32 %v119_v4, %v115_v63  ;;  %v125_v7 = vadd.s32 %v122_v3, %v121_v1 }
  0x20   :  { %v126_v8 = vadd.s32 %v124_v6, %v123_v5 }
  0x22   :  { %v127_v9 = vadd.s32 %v126_v8, %v125_v7 }
  0x24   :  { %129 = vst [vmem:[%s314_s2] sm:$0xff] %v127_v9 }

</bundles_post_ra>
